<compile_context>
chip_gen: v6e
topology: v6e:2x2x1
jax: 0.10.0
libtpu: 0.0.40
codegen_flags: <defaults>
</compile_context>

<pallas_src>
import functools

import jax
import jax.numpy as jnp
from jax.experimental import pallas as pl
from jax.experimental.pallas import tpu as pltpu

LANE = 128            # TPU lane width
IN_DIM = 8            # California-housing features
OUT_DIM = 1
MIN_TILE = 8 * LANE   # 1024: keeps bt % 1024 == 0 so the (8, bt//8) output block is lane-aligned


def _round_up(n, m):
    return ((n + m - 1) // m) * m


def _cdiv(a, b):
    return -(-a // b)


def mlp_kernel(w_ref, xt_ref, o_ref):
    """Fused MLP forward, batch-on-lanes layout.

    w_ref : (8, 128) packed parameter slab (constant index_map -> VMEM-resident)
    xt_ref: (8, bt)  input tile: features on sublanes, batch on lanes
    o_ref : (8, bt//8) sublane-dense output block; row r holds batch lanes
            [r*bt//8, (r+1)*bt//8) of this tile.
    """
    xt = xt_ref[...]                       # (8, bt)

    # 8-lane-aligned parameter slices straight off the resident slab.
    w1 = w_ref[:, 0:8]                     # (8, 8)  layer-1 weight (out, in)
    w2 = w_ref[:, 8:16]                    # (8, 8)  layer-2 weight, rows 4:8 zero
    b1 = w_ref[:, 16:17]                   # (8, 1)
    b2 = w_ref[:, 17:18]                   # (8, 1)  rows 4:8 zero
    w3 = w_ref[:, 18:19]                   # (8, 1)  layer-3 weight column, rows 4:8 zero
    b3 = w_ref[0:1, 19:20]                 # (1, 1)

    # Layers 1 & 2 on the MXU: (8,8) @ (8,bt). Zero-padded rows of w2/b2 stay
    # zero through the ReLU, so the padding is numerically inert.
    h1 = jnp.maximum(
        jnp.dot(w1, xt, preferred_element_type=jnp.float32) + b1, 0.0)   # (8, bt)
    h2 = jnp.maximum(
        jnp.dot(w2, h1, preferred_element_type=jnp.float32) + b2, 0.0)   # (8, bt)

    # Layer 3 (K=4 contraction): VPU broadcast-multiply + XLU sublane reduce.
    y = jnp.sum(w3 * h2, axis=0, keepdims=True) + b3                     # (1, bt)

    # Sublane-densify the output: 128-aligned lane chunks of y become the 8
    # rows of the (8, bt//8) block -> dense HBM writes instead of a 1-of-8
    # sublane-padded (1, N) row.
    c = o_ref.shape[-1]
    for r in range(8):
        o_ref[r:r + 1, :] = y[:, r * c:(r + 1) * c]


def pack_params(params):
    """Pack w1,b1,w2,b2,w3,b3 into one lane-dense (8,128) f32 slab (8-aligned)."""
    slab = jnp.zeros((IN_DIM, LANE), jnp.float32)
    slab = slab.at[:, 0:8].set(params["w1"].astype(jnp.float32))          # (8,8) @ lanes 0:8
    slab = slab.at[0:4, 8:16].set(params["w2"].astype(jnp.float32))       # (4,8) @ lanes 8:16
    slab = slab.at[:, 16].set(params["b1"].astype(jnp.float32))           # (8,)  @ lane 16
    slab = slab.at[0:4, 17].set(params["b2"].astype(jnp.float32))         # (4,)  @ lane 17
    slab = slab.at[0:4, 18].set(params["w3"][0, :].astype(jnp.float32))   # (4,)  @ lane 18
    slab = slab.at[0, 19].set(params["b3"][0].astype(jnp.float32))        # ()    @ lane 19
    return slab


def _choose_tile(batch, block_b):
    """Pick a batch tile: multiple of 1024, large (amortize step overhead),
    capped by block_b, and splitting big batches into >=2 balanced steps so a
    v7x megacore can shard the 'parallel' batch axis across both TCs."""
    block_b = max(MIN_TILE, _round_up(block_b, MIN_TILE))
    if batch <= MIN_TILE:
        return MIN_TILE
    n_steps = max(2, _cdiv(batch, block_b))
    return min(block_b, _round_up(_cdiv(batch, n_steps), MIN_TILE))


@functools.partial(jax.jit, static_argnames=("block_b",))
def simple_mlp_forward_t(xt, params, *, block_b=65536):
    """Fused forward on feature-major input.

    xt: (8, B) f32 — features on sublanes, batch on lanes. Prefer this entry
    point (or cache the transposed buffer) so the transpose is not paid on
    every call. Returns (B, 1).
    """
    in_dim, batch = xt.shape
    assert in_dim == IN_DIM

    bt = _choose_tile(batch, block_b)
    c = bt // 8
    if batch < bt:
        # Tiny-batch path only: pad to one aligned tile (<= 32 KiB, negligible).
        xt = jnp.pad(xt, ((0, 0), (0, bt - batch)))
    num_tiles = _cdiv(batch, bt)        # last block may be ragged; OOB lanes inert

    slab = pack_params(params)

    out = pl.pallas_call(
        mlp_kernel,
        out_shape=jax.ShapeDtypeStruct((num_tiles, 8, c), jnp.float32),
        grid_spec=pltpu.PrefetchScalarGridSpec(
            num_scalar_prefetch=0,
            grid=(num_tiles,),
            in_specs=[
                # Weight slab: constant block index -> DMA'd once, stays resident.
                pl.BlockSpec((IN_DIM, LANE), lambda i: (0, 0)),
                # Input tile (8, bt); double-buffered by the Pallas pipeline.
                pl.BlockSpec((IN_DIM, bt), lambda i: (0, i)),
            ],
            out_specs=pl.BlockSpec((None, 8, c), lambda i: (i, 0, 0)),
        ),
        compiler_params=pltpu.CompilerParams(
            dimension_semantics=("parallel",),      # v7x: shard batch across 2 TCs
            vmem_limit_bytes=48 * 1024 * 1024,      # > v5e 16MiB default, < v7x 64MiB phys
        ),
    )(slab, xt)

    # Row-major flatten of (num_tiles, 8, c) recovers batch order for free;
    # drop the garbage tail lanes from the ragged last block.
    return out.reshape(num_tiles * bt)[:batch][:, None]


def simple_mlp_forward(x, params, *, block_b=65536):
    """x: (B, 8) batch-major, matching the PyTorch module. The transpose to
    feature-major is pure layout plumbing — hoist it to the producer (or call
    simple_mlp_forward_t on a cached (8, B) buffer) to avoid an extra HBM pass
    per call."""
    return simple_mlp_forward_t(jnp.asarray(x, jnp.float32).T, params, block_b=block_b)


def init_params(key, input_dim, output_dim):
    """PyTorch nn.Linear layout/init: w (out,in), b (out,), U(-1/sqrt(in), 1/sqrt(in))."""
    layer_dims = [(8, input_dim), (4, 8), (output_dim, 4)]   # (out, in)
    params = {}
    for i, (fan_out, fan_in) in enumerate(layer_dims, start=1):
        key, kw, kb = jax.random.split(key, 3)
        bound = 1.0 / (fan_in ** 0.5)
        params[f"w{i}"] = jax.random.uniform(
            kw, (fan_out, fan_in), jnp.float32, -bound, bound)
        params[f"b{i}"] = jax.random.uniform(
            kb, (fan_out,), jnp.float32, -bound, bound)
    return params


def reference_forward(x, p):
    h1 = jnp.maximum(x @ p["w1"].T + p["b1"], 0.0)
    h2 = jnp.maximum(h1 @ p["w2"].T + p["b2"], 0.0)
    return h2 @ p["w3"].T + p["b3"]


if __name__ == "__main__":
    key = jax.random.PRNGKey(0)
    kp, kx1, kx2 = jax.random.split(key, 3)
    params = init_params(kp, IN_DIM, OUT_DIM)

    # Small batch: single aligned tile; padded lanes are inert.
    x_small = jax.random.normal(kx1, (8, IN_DIM), jnp.float32)
    y_small = jax.block_until_ready(simple_mlp_forward(x_small, params))
    assert y_small.shape == (8, OUT_DIM)
    assert jnp.allclose(y_small, reference_forward(x_small, params),
                        atol=1e-5, rtol=1e-5), "small-batch mismatch"

    # Multi-step grid with a ragged last block (exercises the >=2-step
    # 'parallel' batch axis and the no-pad-to-tile path).
    x_big = jax.random.normal(kx2, (2500, IN_DIM), jnp.float32)
    y_big = jax.block_until_ready(simple_mlp_forward(x_big, params, block_b=1024))
    assert y_big.shape == (2500, OUT_DIM)
    assert jnp.allclose(y_big, reference_forward(x_big, params),
                        atol=1e-5, rtol=1e-5), "large-batch mismatch"

    print("KERNEL_OK")
</pallas_src>

<mosaic_0001>
module attributes {stable_mosaic.version = 11 : i64} {
  func.func @mlp_kernel(%arg0: i32, %arg1: memref<8x128xf32, #tpu.memory_space<vmem>>, %arg2: memref<8x1024xf32, #tpu.memory_space<vmem>>, %arg3: memref<1x8x128xf32, #tpu.memory_space<vmem>>) attributes {dimension_semantics = [#tpu.dimension_semantics<parallel>], iteration_bounds = array<i64: 1>, scalar_prefetch = 0 : i64, scratch_operands = 0 : i64, tpu.core_type = #tpu.core_type<tc>, window_params = [{pipeline_mode = #tpu.pipeline_mode<synchronous>, transform_indices = @transform_0, window_bounds = array<i64: 8, 128>}, {transform_indices = @transform_1, window_bounds = array<i64: 8, 1024>}, {transform_indices = @transform_2, window_bounds = array<i64: 1, 8, 128>}]} {
    %c0 = arith.constant 0 : index
    %c0_0 = arith.constant 0 : index
    %0 = vector.load %arg2[%c0, %c0_0] : memref<8x1024xf32, #tpu.memory_space<vmem>>, vector<8x1024xf32>
    %c0_1 = arith.constant 0 : index
    %c0_2 = arith.constant 0 : index
    %1 = vector.load %arg1[%c0_1, %c0_2] : memref<8x128xf32, #tpu.memory_space<vmem>>, vector<8x8xf32>
    %c0_3 = arith.constant 0 : index
    %c8 = arith.constant 8 : index
    %2 = vector.load %arg1[%c0_3, %c8] : memref<8x128xf32, #tpu.memory_space<vmem>>, vector<8x8xf32>
    %c0_4 = arith.constant 0 : index
    %c16 = arith.constant 16 : index
    %3 = vector.load %arg1[%c0_4, %c16] : memref<8x128xf32, #tpu.memory_space<vmem>>, vector<8x1xf32>
    %c0_5 = arith.constant 0 : index
    %c17 = arith.constant 17 : index
    %4 = vector.load %arg1[%c0_5, %c17] : memref<8x128xf32, #tpu.memory_space<vmem>>, vector<8x1xf32>
    %c0_6 = arith.constant 0 : index
    %c18 = arith.constant 18 : index
    %5 = vector.load %arg1[%c0_6, %c18] : memref<8x128xf32, #tpu.memory_space<vmem>>, vector<8x1xf32>
    %c0_7 = arith.constant 0 : index
    %c19 = arith.constant 19 : index
    %6 = vector.load %arg1[%c0_7, %c19] : memref<8x128xf32, #tpu.memory_space<vmem>>, vector<1x1xf32>
    %cst = arith.constant dense<0.000000e+00> : vector<8x1024xf32>
    %7 = tpu.matmul %1, %0, %cst {dimension_numbers = #tpu.dot_dimension_numbers<[1], [0], [0], [1], [0, 0, 1, 1], [], []>} : vector<8x8xf32>, vector<8x1024xf32>, vector<8x1024xf32> -> vector<8x1024xf32>
    %8 = vector.broadcast %3 : vector<8x1xf32> to vector<8x1024xf32>
    %9 = arith.addf %7, %8 : vector<8x1024xf32>
    %cst_8 = arith.constant 0.000000e+00 : f32
    %10 = vector.broadcast %cst_8 : f32 to vector<8x1024xf32>
    %11 = arith.maximumf %9, %10 : vector<8x1024xf32>
    %cst_9 = arith.constant dense<0.000000e+00> : vector<8x1024xf32>
    %12 = tpu.matmul %2, %11, %cst_9 {dimension_numbers = #tpu.dot_dimension_numbers<[1], [0], [0], [1], [0, 0, 1, 1], [], []>} : vector<8x8xf32>, vector<8x1024xf32>, vector<8x1024xf32> -> vector<8x1024xf32>
    %13 = vector.broadcast %4 : vector<8x1xf32> to vector<8x1024xf32>
    %14 = arith.addf %12, %13 : vector<8x1024xf32>
    %cst_10 = arith.constant 0.000000e+00 : f32
    %15 = vector.broadcast %cst_10 : f32 to vector<8x1024xf32>
    %16 = arith.maximumf %14, %15 : vector<8x1024xf32>
    %17 = vector.broadcast %5 : vector<8x1xf32> to vector<8x1024xf32>
    %18 = arith.mulf %17, %16 : vector<8x1024xf32>
    %cst_11 = arith.constant dense<0.000000e+00> : vector<1024xf32>
    %19 = vector.multi_reduction <add>, %18, %cst_11 [0] : vector<8x1024xf32> to vector<1024xf32>
    %20 = vector.shape_cast %19 : vector<1024xf32> to vector<1x1024xf32>
    %21 = vector.broadcast %6 : vector<1x1xf32> to vector<1x1024xf32>
    %22 = arith.addf %20, %21 : vector<1x1024xf32>
    %23 = vector.extract_strided_slice %22 {offsets = [0, 0], sizes = [1, 128], strides = [1, 1]} : vector<1x1024xf32> to vector<1x128xf32>
    %c0_12 = arith.constant 0 : index
    %c0_13 = arith.constant 0 : index
    %c0_14 = arith.constant 0 : index
    %24 = vector.load %arg3[%c0_12, %c0_13, %c0_14] : memref<1x8x128xf32, #tpu.memory_space<vmem>>, vector<1x1x128xf32>
    %25 = vector.shape_cast %24 : vector<1x1x128xf32> to vector<1x128xf32>
    %26 = vector.shape_cast %23 : vector<1x128xf32> to vector<1x1x128xf32>
    tpu.vector_store %arg3[%c0_12, %c0_13, %c0_14], %26 {strides = array<i32>} : memref<1x8x128xf32, #tpu.memory_space<vmem>>, vector<1x1x128xf32>,
    %27 = vector.extract_strided_slice %22 {offsets = [0, 128], sizes = [1, 128], strides = [1, 1]} : vector<1x1024xf32> to vector<1x128xf32>
    %c0_15 = arith.constant 0 : index
    %c1 = arith.constant 1 : index
    %c0_16 = arith.constant 0 : index
    %28 = vector.load %arg3[%c0_15, %c1, %c0_16] : memref<1x8x128xf32, #tpu.memory_space<vmem>>, vector<1x1x128xf32>
    %29 = vector.shape_cast %28 : vector<1x1x128xf32> to vector<1x128xf32>
    %30 = vector.shape_cast %27 : vector<1x128xf32> to vector<1x1x128xf32>
    tpu.vector_store %arg3[%c0_15, %c1, %c0_16], %30 {strides = array<i32>} : memref<1x8x128xf32, #tpu.memory_space<vmem>>, vector<1x1x128xf32>,
    %31 = vector.extract_strided_slice %22 {offsets = [0, 256], sizes = [1, 128], strides = [1, 1]} : vector<1x1024xf32> to vector<1x128xf32>
    %c0_17 = arith.constant 0 : index
    %c2 = arith.constant 2 : index
    %c0_18 = arith.constant 0 : index
    %32 = vector.load %arg3[%c0_17, %c2, %c0_18] : memref<1x8x128xf32, #tpu.memory_space<vmem>>, vector<1x1x128xf32>
    %33 = vector.shape_cast %32 : vector<1x1x128xf32> to vector<1x128xf32>
    %34 = vector.shape_cast %31 : vector<1x128xf32> to vector<1x1x128xf32>
    tpu.vector_store %arg3[%c0_17, %c2, %c0_18], %34 {strides = array<i32>} : memref<1x8x128xf32, #tpu.memory_space<vmem>>, vector<1x1x128xf32>,
    %35 = vector.extract_strided_slice %22 {offsets = [0, 384], sizes = [1, 128], strides = [1, 1]} : vector<1x1024xf32> to vector<1x128xf32>
    %c0_19 = arith.constant 0 : index
    %c3 = arith.constant 3 : index
    %c0_20 = arith.constant 0 : index
    %36 = vector.load %arg3[%c0_19, %c3, %c0_20] : memref<1x8x128xf32, #tpu.memory_space<vmem>>, vector<1x1x128xf32>
    %37 = vector.shape_cast %36 : vector<1x1x128xf32> to vector<1x128xf32>
    %38 = vector.shape_cast %35 : vector<1x128xf32> to vector<1x1x128xf32>
    tpu.vector_store %arg3[%c0_19, %c3, %c0_20], %38 {strides = array<i32>} : memref<1x8x128xf32, #tpu.memory_space<vmem>>, vector<1x1x128xf32>,
    %39 = vector.extract_strided_slice %22 {offsets = [0, 512], sizes = [1, 128], strides = [1, 1]} : vector<1x1024xf32> to vector<1x128xf32>
    %c0_21 = arith.constant 0 : index
    %c4 = arith.constant 4 : index
    %c0_22 = arith.constant 0 : index
    %40 = vector.load %arg3[%c0_21, %c4, %c0_22] : memref<1x8x128xf32, #tpu.memory_space<vmem>>, vector<1x1x128xf32>
    %41 = vector.shape_cast %40 : vector<1x1x128xf32> to vector<1x128xf32>
    %42 = vector.shape_cast %39 : vector<1x128xf32> to vector<1x1x128xf32>
    tpu.vector_store %arg3[%c0_21, %c4, %c0_22], %42 {strides = array<i32>} : memref<1x8x128xf32, #tpu.memory_space<vmem>>, vector<1x1x128xf32>,
    %43 = vector.extract_strided_slice %22 {offsets = [0, 640], sizes = [1, 128], strides = [1, 1]} : vector<1x1024xf32> to vector<1x128xf32>
    %c0_23 = arith.constant 0 : index
    %c5 = arith.constant 5 : index
    %c0_24 = arith.constant 0 : index
    %44 = vector.load %arg3[%c0_23, %c5, %c0_24] : memref<1x8x128xf32, #tpu.memory_space<vmem>>, vector<1x1x128xf32>
    %45 = vector.shape_cast %44 : vector<1x1x128xf32> to vector<1x128xf32>
    %46 = vector.shape_cast %43 : vector<1x128xf32> to vector<1x1x128xf32>
    tpu.vector_store %arg3[%c0_23, %c5, %c0_24], %46 {strides = array<i32>} : memref<1x8x128xf32, #tpu.memory_space<vmem>>, vector<1x1x128xf32>,
    %47 = vector.extract_strided_slice %22 {offsets = [0, 768], sizes = [1, 128], strides = [1, 1]} : vector<1x1024xf32> to vector<1x128xf32>
    %c0_25 = arith.constant 0 : index
    %c6 = arith.constant 6 : index
    %c0_26 = arith.constant 0 : index
    %48 = vector.load %arg3[%c0_25, %c6, %c0_26] : memref<1x8x128xf32, #tpu.memory_space<vmem>>, vector<1x1x128xf32>
    %49 = vector.shape_cast %48 : vector<1x1x128xf32> to vector<1x128xf32>
    %50 = vector.shape_cast %47 : vector<1x128xf32> to vector<1x1x128xf32>
    tpu.vector_store %arg3[%c0_25, %c6, %c0_26], %50 {strides = array<i32>} : memref<1x8x128xf32, #tpu.memory_space<vmem>>, vector<1x1x128xf32>,
    %51 = vector.extract_strided_slice %22 {offsets = [0, 896], sizes = [1, 128], strides = [1, 1]} : vector<1x1024xf32> to vector<1x128xf32>
    %c0_27 = arith.constant 0 : index
    %c7 = arith.constant 7 : index
    %c0_28 = arith.constant 0 : index
    %52 = vector.load %arg3[%c0_27, %c7, %c0_28] : memref<1x8x128xf32, #tpu.memory_space<vmem>>, vector<1x1x128xf32>
    %53 = vector.shape_cast %52 : vector<1x1x128xf32> to vector<1x128xf32>
    %54 = vector.shape_cast %51 : vector<1x128xf32> to vector<1x1x128xf32>
    tpu.vector_store %arg3[%c0_27, %c7, %c0_28], %54 {strides = array<i32>} : memref<1x8x128xf32, #tpu.memory_space<vmem>>, vector<1x1x128xf32>,
    return
  }
  func.func @transform_0(%arg0: i32) -> (i32, i32) {
    %c0_i32 = arith.constant 0 : i32
    %c0_i32_0 = arith.constant 0 : i32
    %c0_i32_1 = arith.constant 0 : i32
    return %c0_i32, %c0_i32_0 : i32, i32
  }
  func.func @transform_1(%arg0: i32) -> (i32, i32) {
    %c0_i32 = arith.constant 0 : i32
    %c0_i32_0 = arith.constant 0 : i32
    return %c0_i32, %arg0 : i32, i32
  }
  func.func @transform_2(%arg0: i32) -> (i32, i32, i32) {
    %c0_i32 = arith.constant 0 : i32
    %c0_i32_0 = arith.constant 0 : i32
    %c0_i32_1 = arith.constant 0 : i32
    return %arg0, %c0_i32, %c0_i32_0 : i32, i32, i32
  }
}

</mosaic_0001>

<bundles_post_ra>
// kernel: simple_mlp_forward_t.1
= control target key start
LH: loop header
LB: loop body
LE: loop exit
PB: predicated region body
PF: predicated region fallthrough
CT: control target
= control target key end

     0   :  { %v724_v3 = vmov 0.0   ;;  %vm26_vm0 = vcmask 64512   ;;  %v725_v10 = vmov 16   ;;  %v727_v12 = vmov 17   ;;  %s815_s1 = inlined_call_operand.vmem [shape: f32[8,1024], index: 1, kind: input, shape index: {}]   ;;  %s816_s0 = inlined_call_operand.vmem [shape: f32[8,128], index: 0, kind: input, shape index: {}]   ;;  %s817_s2 = inlined_call_operand.vmem [shape: f32[1,8,128], index: 2, kind: output, shape index: {}]  }
   0x1   :  { %v12_v0 = vld [vmem:[%s815_s1 + $0x8] sm:$0xff]  ;;  %v14_v1 = vld [vmem:[%s815_s1 + $0x18] sm:$0xff]  ;;  %v11_v2 = vld [vmem:[%s815_s1] sm:$0xff]  ;;  %93 = vmatprep.mubr.f32.mxu0 %v724_v3  ;;  %164 = vmatprep.mubr.f32.mxu1 %v724_v3  ;;  %v728_v13 = vmov 19   ;;  %v729_v14 = vmov 18  }
   0x2   :  { %59 = vmatprep.subr.mxu0 %v12_v0  ;;  %130 = vmatprep.subr.mxu1 %v14_v1  ;;  %v13_v4 = vld [vmem:[%s815_s1 + $0x10] sm:$0xff]  ;;  %v19_v5 = vld [vmem:[%s816_s0] sm:$0xff]  ;;  %v16_v6 = vld [vmem:[%s815_s1 + $0x28] sm:$0xff] }
   0x3   :  { %60 = vmatpush1.msra.mxu0 %v11_v2  ;;  %131 = vmatpush1.msra.mxu1 %v13_v4  ;;  %v18_v7 = vld [vmem:[%s815_s1 + $0x38] sm:$0xff]  ;;  %v15_v8 = vld [vmem:[%s815_s1 + $0x20] sm:$0xff]  ;;  %v17_v9 = vld [vmem:[%s815_s1 + $0x30] sm:$0xff]  ;;  %s726_s1 = smov 120  }
   0x4   :  { %706 = vmatmul.mubr.msk.f32.vlgmr.msra.gmra.mxu0 %vm26_vm0, %v19_v5  ;;  %707 = vmatmul.mubr.msk.f32.vlgmr.msra.gmra.mxu1 %vm26_vm0, %v19_v5  ;;  %v20_v11 = vld [vmem:[%s816_s0] sm:$0x1] }
   0x5   :  { %201 = vmatprep.subr.mxu0 %v16_v6  ;;  %272 = vmatprep.subr.mxu1 %v18_v7 }
   0x6   :  { %202 = vmatpush1.msra.mxu0 %v15_v8  ;;  %235 = vmatprep.mubr.f32.mxu0 %v724_v3 }
   0x7   :  { %273 = vmatpush1.msra.mxu1 %v17_v9  ;;  %306 = vmatprep.mubr.f32.mxu1 %v724_v3 }
   0x8   :  { %708 = vmatmul.mubr.msk.f32.vlgmr.msra.gmra.mxu0 %vm26_vm0, %v19_v5  ;;  %709 = vmatmul.mubr.msk.f32.vlgmr.msra.gmra.mxu1 %vm26_vm0, %v19_v5 }
   0x9   :  { %720 = vset.pattern.permute.xlu0 %v725_v10  ;;  %393 = vmatprep.mubr.f32.mxu0 %v724_v3 }
   0xa   :  { %23 = vperm.xlu0 %720, %v19_v5   ;;  %464 = vmatprep.mubr.f32.mxu1 %v724_v3 }
   0xb   :  { %721 = vset.pattern.permute.xlu1 %v727_v12 }
   0xc   :  { %322 = vperm.xlu1 %721, %v19_v5  }
   0xe   :  { %325 = vrot.lane.b32.xlu0 %v19_v5, %s726_s1 }
   0xf   :  { %723 = vset.pattern.permute.xlu0 %v728_v13 }
  0x10   :  { %722 = vset.pattern.permute.xlu1 %v729_v14 }
  0x11   :  { %622 = vperm.xlu1 %722, %v19_v5  }
  0x12   :  { %683 = vperm.xlu0 %723, %v20_v11  }
  0x85   :  { %v24_v15 = vpop.permute.xlu0 %23 }
  0x87   :  { %v323_v41 = vpop.permute.xlu1 %322 }
  0x89   :  { %v326_v28 = vpop.permute.xlu0 %325 }
  0x8c   :  { %v623_v46 = vpop.permute.xlu1 %622 }
  0xc4   :  { %v95_v16 = vpop.f32.mrf.mxu0  ;;  %v166_v17 = vpop.f32.mrf.mxu1 }
  0xc5   :  { %v96_v18 = vadd.f32 %v95_v16, %v24_v15  ;;  %v167_v19 = vadd.f32 %v166_v17, %v24_v15 }
  0xc6   :  { %v97_v20 = vpop.f32.mrf.mxu0  ;;  %v168_v21 = vpop.f32.mrf.mxu1 }
  0xc7   :  { %v98_v22 = vadd.f32 %v97_v20, %v24_v15  ;;  %v169_v23 = vadd.f32 %v168_v21, %v24_v15  ;;  %v313_v29 = vmax.f32 %v96_v18, 0.0  ;;  %v315_v30 = vmax.f32 %v167_v19, 0.0 }
  0xc8   :  { %v237_v24 = vpop.f32.mrf.mxu0  ;;  %v308_v25 = vpop.f32.mrf.mxu1 }
  0xc9   :  { %v314_v26 = vmax.f32 %v98_v22, 0.0  ;;  %v316_v27 = vmax.f32 %v169_v23, 0.0  ;;  %v238_v31 = vadd.f32 %v237_v24, %v24_v15  ;;  %v309_v32 = vadd.f32 %v308_v25, %v24_v15 }
  0xca   :  { %v239_v33 = vpop.f32.mrf.mxu0  ;;  %v310_v34 = vpop.f32.mrf.mxu1 }
  0xcb   :  { %v240_v35 = vadd.f32 %v239_v33, %v24_v15  ;;  %v311_v36 = vadd.f32 %v310_v34, %v24_v15  ;;  %359 = vmatprep.subr.mxu0 %v314_v26  ;;  %430 = vmatprep.subr.mxu1 %v316_v27  ;;  %v317_v39 = vmax.f32 %v238_v31, 0.0  ;;  %v319_v40 = vmax.f32 %v309_v32, 0.0 }
  0xcc   :  { %360 = vmatpush1.msra.mxu0 %v313_v29  ;;  %431 = vmatpush1.msra.mxu1 %v315_v30 }
  0xcd   :  { %v318_v37 = vmax.f32 %v240_v35, 0.0  ;;  %v320_v38 = vmax.f32 %v311_v36, 0.0  ;;  %710 = vmatmul.mubr.msk.f32.vlgmr.msra.gmra.mxu0 %vm26_vm0, %v326_v28  ;;  %711 = vmatmul.mubr.msk.f32.vlgmr.msra.gmra.mxu1 %vm26_vm0, %v326_v28 }
  0xce   :  { %535 = vmatprep.mubr.f32.mxu0 %v724_v3  ;;  %606 = vmatprep.mubr.f32.mxu1 %v724_v3 }
  0xcf   :  { %501 = vmatprep.subr.mxu0 %v318_v37  ;;  %572 = vmatprep.subr.mxu1 %v320_v38 }
  0xd0   :  { %502 = vmatpush1.msra.mxu0 %v317_v39  ;;  %573 = vmatpush1.msra.mxu1 %v319_v40  ;;  %v684_v39 = vpop.permute.xlu0 %683 }
  0xd1   :  { %712 = vmatmul.mubr.msk.f32.vlgmr.msra.gmra.mxu0 %vm26_vm0, %v326_v28  ;;  %713 = vmatmul.mubr.msk.f32.vlgmr.msra.gmra.mxu1 %vm26_vm0, %v326_v28 }
 0x18d   :  { %v395_v42 = vpop.f32.mrf.mxu0  ;;  %v466_v43 = vpop.f32.mrf.mxu1 }
 0x18e   :  { %v396_v44 = vadd.f32 %v395_v42, %v323_v41  ;;  %v467_v45 = vadd.f32 %v466_v43, %v323_v41 }
 0x18f   :  { %v397_v47 = vpop.f32.mrf.mxu0  ;;  %v468_v48 = vpop.f32.mrf.mxu1 }
 0x190   :  { %v613_v49 = vmax.f32 %v396_v44, 0.0  ;;  %v615_v50 = vmax.f32 %v467_v45, 0.0  ;;  %v398_v51 = vadd.f32 %v397_v47, %v323_v41  ;;  %v469_v52 = vadd.f32 %v468_v48, %v323_v41 }
 0x191   :  { %v537_v53 = vpop.f32.mrf.mxu0  ;;  %v608_v54 = vpop.f32.mrf.mxu1 }
 0x192   :  { %v614_v55 = vmax.f32 %v398_v51, 0.0  ;;  %v616_v56 = vmax.f32 %v469_v52, 0.0  ;;  %v625_v57 = vmul.f32 %v623_v46, %v613_v49  ;;  %v627_v58 = vmul.f32 %v623_v46, %v615_v50 }
 0x193   :  { %v538_v59 = vadd.f32 %v537_v53, %v323_v41  ;;  %v609_v60 = vadd.f32 %v608_v54, %v323_v41  ;;  %v539_v61 = vpop.f32.mrf.mxu0  ;;  %v610_v62 = vpop.f32.mrf.mxu1 }
 0x194   :  { %v626_v63 = vmul.f32 %v623_v46, %v614_v55  ;;  %v628_v0 = vmul.f32 %v623_v46, %v616_v56  ;;  %v633_v1 = vrot.slane %v625_v57, 4  ;;  %v645_v2 = vrot.slane %v627_v58, 4 }
 0x195   :  { %v617_v3 = vmax.f32 %v538_v59, 0.0  ;;  %v619_v4 = vmax.f32 %v609_v60, 0.0  ;;  %v540_v5 = vadd.f32 %v539_v61, %v323_v41  ;;  %v611_v6 = vadd.f32 %v610_v62, %v323_v41 }
 0x196   :  { %v634_v7 = vadd.f32 %v633_v1, %v625_v57  ;;  %v639_v8 = vrot.slane %v626_v63, 4  ;;  %v646_v9 = vadd.f32 %v645_v2, %v627_v58  ;;  %v651_v10 = vrot.slane %v628_v0, 4 }
 0x197   :  { %v629_v11 = vmul.f32 %v623_v46, %v617_v3  ;;  %v631_v12 = vmul.f32 %v623_v46, %v619_v4  ;;  %v618_v13 = vmax.f32 %v540_v5, 0.0  ;;  %v620_v14 = vmax.f32 %v611_v6, 0.0 }
 0x198   :  { %v635_v15 = vrot.slane %v634_v7, 2  ;;  %v640_v16 = vadd.f32 %v639_v8, %v626_v63  ;;  %v647_v17 = vrot.slane %v646_v9, 2  ;;  %v652_v18 = vadd.f32 %v651_v10, %v628_v0 }
 0x199   :  { %v657_v19 = vrot.slane %v629_v11, 4  ;;  %v669_v20 = vrot.slane %v631_v12, 4  ;;  %v630_v21 = vmul.f32 %v623_v46, %v618_v13  ;;  %v632_v22 = vmul.f32 %v623_v46, %v620_v14 }
 0x19a   :  { %v641_v23 = vrot.slane %v640_v16, 2  ;;  %v653_v24 = vrot.slane %v652_v18, 2  ;;  %v636_v25 = vadd.f32 %v635_v15, %v634_v7  ;;  %v648_v26 = vadd.f32 %v647_v17, %v646_v9 }
 0x19b   :  { %v658_v27 = vadd.f32 %v657_v19, %v629_v11  ;;  %v670_v28 = vadd.f32 %v669_v20, %v631_v12  ;;  %v663_v29 = vrot.slane %v630_v21, 4  ;;  %v675_v30 = vrot.slane %v632_v22, 4 }
 0x19c   :  { %v637_v31 = vrot.slane %v636_v25, 1  ;;  %v642_v32 = vadd.f32 %v641_v23, %v640_v16  ;;  %v649_v33 = vrot.slane %v648_v26, 1  ;;  %v654_v34 = vadd.f32 %v653_v24, %v652_v18 }
 0x19d   :  { %v659_v35 = vrot.slane %v658_v27, 2  ;;  %v671_v36 = vrot.slane %v670_v28, 2  ;;  %v664_v37 = vadd.f32 %v663_v29, %v630_v21  ;;  %v676_v38 = vadd.f32 %v675_v30, %v632_v22 }
 0x19e   :  { %v638_v40 = vadd.f32 %v637_v31, %v636_v25  ;;  %v643_v41 = vrot.slane %v642_v32, 1  ;;  %v650_v42 = vadd.f32 %v649_v33, %v648_v26  ;;  %v655_v43 = vrot.slane %v654_v34, 1 }
 0x19f   :  { %v660_v44 = vadd.f32 %v659_v35, %v658_v27  ;;  %v672_v45 = vadd.f32 %v671_v36, %v670_v28  ;;  %v665_v46 = vrot.slane %v664_v37, 2  ;;  %v677_v47 = vrot.slane %v676_v38, 2 }
 0x1a0   :  { %v644_v48 = vadd.f32 %v643_v41, %v642_v32  ;;  %v656_v49 = vadd.f32 %v655_v43, %v654_v34  ;;  %v686_v50 = vadd.f32 %v684_v39, %v638_v40  ;;  %v688_v51 = vadd.f32 %v684_v39, %v650_v42 }
 0x1a1   :  { %v661_v52 = vrot.slane %v660_v44, 1  ;;  %v673_v53 = vrot.slane %v672_v45, 1  ;;  %v666_v54 = vadd.f32 %v665_v46, %v664_v37  ;;  %v678_v55 = vadd.f32 %v677_v47, %v676_v38 }
 0x1a2   :  { %v687_v56 = vadd.f32 %v684_v39, %v644_v48  ;;  %v689_v57 = vadd.f32 %v684_v39, %v656_v49  ;;  %694 = vst [vmem:[%s817_s2] sm:$0x1] %v686_v50  ;;  %696 = vst [vmem:[%s817_s2 + $0x2] sm:$0x1] %v688_v51 }
 0x1a3   :  { %v662_v58 = vadd.f32 %v661_v52, %v660_v44  ;;  %v674_v59 = vadd.f32 %v673_v53, %v672_v45  ;;  %v667_v60 = vrot.slane %v666_v54, 1  ;;  %v679_v61 = vrot.slane %v678_v55, 1 }
 0x1a4   :  { %695 = vst [vmem:[%s817_s2 + $0x1] sm:$0x1] %v687_v56  ;;  %697 = vst [vmem:[%s817_s2 + $0x3] sm:$0x1] %v689_v57 }
 0x1a5   :  { %v668_v62 = vadd.f32 %v667_v60, %v666_v54  ;;  %v680_v63 = vadd.f32 %v679_v61, %v678_v55  ;;  %v690_v0 = vadd.f32 %v684_v39, %v662_v58  ;;  %v692_v1 = vadd.f32 %v684_v39, %v674_v59 }
 0x1a7   :  { %v691_v2 = vadd.f32 %v684_v39, %v668_v62  ;;  %v693_v3 = vadd.f32 %v684_v39, %v680_v63  ;;  %698 = vst [vmem:[%s817_s2 + $0x4] sm:$0x1] %v690_v0  ;;  %700 = vst [vmem:[%s817_s2 + $0x6] sm:$0x1] %v692_v1 }
 0x1a9   :  { %699 = vst [vmem:[%s817_s2 + $0x5] sm:$0x1] %v691_v2  ;;  %701 = vst [vmem:[%s817_s2 + $0x7] sm:$0x1] %v693_v3 }

</bundles_post_ra>
